<compile_context>
chip_gen: v6e
topology: v6e:2x2x1
jax: 0.10.0
libtpu: 0.0.40
codegen_flags: <defaults>
</compile_context>

<pallas_src>
import jax
import jax.numpy as jnp
from jax.experimental import pallas as pl
from jax.experimental.pallas import tpu as pltpu

_LANE = 128
_MAX_ROW_TILE = 32768        # columns per grid step (only ~44 B / column streamed now)
_ACC_ROWS = 8                # sq_x, sq_y, sq_w, sq_h, conf_obj, conf_noobj, n_obj, n_noobj
_VMEM_LIMIT = 32 * 1024 * 1024


def _num_core_splits():
    """2-way core split only on dual-TensorCore chips (v7x); 1 on v5e / v6e."""
    try:
        kind = jax.devices()[0].device_kind.lower()
    except Exception:
        return 1
    return 2 if ("v7" in kind or "7x" in kind) else 1


def _plan_rows(n, pred_itemsize, ncores, max_tile=_MAX_ROW_TILE,
               vmem_budget=8 * 1024 * 1024):
    """Pick a lane-dense row tile (multiple of 128) and the zero-padded column count."""
    per_col_bytes = 2 * (5 * pred_itemsize + 6 * 4)        # double-buffered input blocks
    cap = max(_LANE, (vmem_budget // per_col_bytes) // _LANE * _LANE)
    max_tile = min(max_tile, cap)
    blocks_needed = -(-n // (ncores * _LANE))               # 128-lane blocks per core
    tile_blocks = max(1, min(blocks_needed, max_tile // _LANE))
    tile = tile_blocks * _LANE
    n_inner = -(-blocks_needed // tile_blocks)
    n_pad = ncores * n_inner * tile
    return n_pad, tile, n_inner


# ------------------------------------------------------------------ fused decode + loss kernel
def _fused_region_loss_kernel(pred_ref, tgt_ref, out_ref, acc_ref):
    i = pl.program_id(1)

    @pl.when(i == 0)
    def _init():
        acc_ref[...] = jnp.zeros_like(acc_ref)

    f32 = jnp.float32
    # per-channel ref slices (zero-cost views -> small single-row loads), no whole-block load
    obj = tgt_ref[4:5, :]
    noobj = tgt_ref[5:6, :]

    # decode only what the loss needs (x, y use sigmoid; w, h stay raw logits)
    sx = jax.nn.sigmoid(pred_ref[0:1, :].astype(f32))
    sy = jax.nn.sigmoid(pred_ref[1:2, :].astype(f32))

    # coord MSE contributions (masked by obj)
    cx = (sx - tgt_ref[0:1, :]) ** 2 * obj
    cy = (sy - tgt_ref[1:2, :]) ** 2 * obj
    cw = (pred_ref[2:3, :].astype(f32) - tgt_ref[2:3, :]) ** 2 * obj
    ch = (pred_ref[3:4, :].astype(f32) - tgt_ref[3:4, :]) ** 2 * obj

    # conf BCE from raw logits via the identity  bce = softplus(z) - z*t  (1 exp + 1 log),
    # clamped at 100 (binary targets -> matches torch BCELoss's -100 log clamp exactly).
    z = pred_ref[4:5, :].astype(f32)
    softplus_z = jnp.maximum(z, 0.0) + jnp.log(1.0 + jnp.exp(-jnp.abs(z)))
    bconf = jnp.minimum(softplus_z - z * obj, 100.0)        # tconf == obj_mask.float()

    def rsum(v):                         # one cross-lane XLU reduce -> (1, 1) partial
        return jnp.sum(v, axis=1, keepdims=True)

    # tiny (8,128) accumulator: scalar partials broadcast across the lanes of each row;
    # no (1, tile)-sized masked read-modify-writes, no large scratch.
    acc_ref[0:1, :] += rsum(cx)
    acc_ref[1:2, :] += rsum(cy)
    acc_ref[2:3, :] += rsum(cw)
    acc_ref[3:4, :] += rsum(ch)
    acc_ref[4:5, :] += rsum(bconf * obj)
    acc_ref[5:6, :] += rsum(bconf * noobj)
    acc_ref[6:7, :] += rsum(obj)
    acc_ref[7:8, :] += rsum(noobj)

    # single lane-dense store in the epilogue (out block never needs zero-init)
    @pl.when(i == pl.num_programs(1) - 1)
    def _fin():
        out_ref[...] = acc_ref[...][None, :, :]


def pallas_region_loss_sums(pred_cf, tgt_cf, tile, n_inner, ncores):
    cp = pred_cf.shape[0]        # 5
    ct = tgt_cf.shape[0]         # 6
    row_map = lambda c, i, n=n_inner: (0, c * n + i)
    if ncores > 1:
        lead_sem = getattr(pltpu, "CORE_PARALLEL", pltpu.PARALLEL)   # shard across v7x TCs
    else:
        lead_sem = pltpu.ARBITRARY                                   # size-1 axis on v5e/v6e
    out = pl.pallas_call(
        _fused_region_loss_kernel,
        out_shape=jax.ShapeDtypeStruct((ncores, _ACC_ROWS, _LANE), jnp.float32),
        grid_spec=pltpu.PrefetchScalarGridSpec(
            num_scalar_prefetch=0,
            grid=(ncores, n_inner),
            in_specs=[pl.BlockSpec((cp, tile), row_map),
                      pl.BlockSpec((ct, tile), row_map)],
            out_specs=pl.BlockSpec((1, _ACC_ROWS, _LANE), lambda c, i: (c, 0, 0)),
            scratch_shapes=[pltpu.VMEM((_ACC_ROWS, _LANE), jnp.float32)]),
        compiler_params=pltpu.CompilerParams(
            dimension_semantics=(lead_sem, pltpu.ARBITRARY),
            vmem_limit_bytes=_VMEM_LIMIT),
    )(pred_cf, tgt_cf)
    # every stat row is broadcast across the 128 lanes: take lane 0, sum per-core partials
    return out[:, :, 0].sum(axis=0)


# ------------------------------------------------------------------ glue: build_targets (scatter)
def build_targets_jax(B, A, G, target, scaled_anchors, ignore_thres):
    target_boxes = target[:, 2:6] * G
    gxy = target_boxes[:, :2]
    gwh = target_boxes[:, 2:]
    aw = scaled_anchors[:, 0:1]                 # (A,1)
    ah = scaled_anchors[:, 1:2]
    gw = gwh[:, 0][None, :]                     # (1,nT)
    gh = gwh[:, 1][None, :]
    inter = jnp.minimum(aw, gw) * jnp.minimum(ah, gh)
    union = aw * ah + 1e-16 + gw * gh - inter
    ious = inter / union                        # (A, nT) wh-IoU
    best_n = jnp.argmax(ious, axis=0)           # (nT,)

    b = target[:, 0].astype(jnp.int32)
    labels = target[:, 1].astype(jnp.int32)
    gx = gxy[:, 0]
    gy = gxy[:, 1]
    gi = gx.astype(jnp.int32)
    gj = gy.astype(jnp.int32)

    obj = jnp.zeros((B, A, G, G), jnp.float32).at[b, best_n, gj, gi].set(1.0)
    A_idx = jnp.arange(A, dtype=jnp.int32)
    ign = jnp.zeros((B, A, G, G), jnp.float32).at[
        b[:, None], A_idx[None, :], gj[:, None], gi[:, None]
    ].add((ious.T > ignore_thres).astype(jnp.float32))
    noobj = jnp.where((obj > 0) | (ign > 0), 0.0, 1.0)

    z = jnp.zeros((B, A, G, G), jnp.float32)
    tx = z.at[b, best_n, gj, gi].set(gx - jnp.floor(gx))
    ty = z.at[b, best_n, gj, gi].set(gy - jnp.floor(gy))
    tw = z.at[b, best_n, gj, gi].set(jnp.log(gwh[:, 0] / scaled_anchors[best_n, 0] + 1e-16))
    th = z.at[b, best_n, gj, gi].set(jnp.log(gwh[:, 1] / scaled_anchors[best_n, 1] + 1e-16))
    # per-cell class label map (replaces the big (B,A,G,G,C) one-hot tcls scatter)
    lbl_map = jnp.full((B, A, G, G), -1, jnp.int32).at[b, best_n, gj, gi].set(labels)
    return obj, noobj, tx, ty, tw, th, lbl_map


def _softplus(z):
    return jnp.maximum(z, 0.0) + jnp.log1p(jnp.exp(-jnp.abs(z)))


# ------------------------------------------------------------------ per-scale RegionLoss_v4.forward
def region_loss_scale(out_nchw, target, anchors_px, num_classes, img_dim,
                      ignore_thres=0.5, obj_scale=1.0, noobj_scale=100.0):
    B = out_nchw.shape[0]
    G = out_nchw.shape[2]
    A = anchors_px.shape[0]
    C = num_classes
    N = B * A * G * G
    stride = img_dim / G
    scaled_anchors = (anchors_px / stride).astype(jnp.float32)

    pred = out_nchw.reshape(B, A, 5 + C, G, G)              # raw conv logits, native dtype

    # 5-row channels-first, lane-dense slab for the kernel: [x, y, w, h, conf] logits.
    # Kept in the conv output's native dtype (bf16 outputs halve the dominant DMA stream);
    # the kernel upcasts per channel.
    pred_cf = pred[:, :, :5].transpose(2, 0, 1, 3, 4).reshape(5, N)

    obj, noobj, tx, ty, tw, th, lbl_map = build_targets_jax(
        B, A, G, target, scaled_anchors, ignore_thres)

    # 6-row f32 target slab: [tx, ty, tw, th, obj, noobj]; same (b, a, gj, gi) column order
    tgt_cf = jnp.stack([tx, ty, tw, th, obj, noobj], axis=0).reshape(6, N).astype(jnp.float32)

    ncores = _num_core_splits()
    n_pad, tile, n_inner = _plan_rows(N, pred_cf.dtype.itemsize, ncores)
    if n_pad > N:   # zero padding is loss-neutral: obj == noobj == 0 on padded columns
        pred_cf = jnp.pad(pred_cf, ((0, 0), (0, n_pad - N)))
        tgt_cf = jnp.pad(tgt_cf, ((0, 0), (0, n_pad - N)))

    sums = pallas_region_loss_sums(pred_cf, tgt_cf, tile, n_inner, ncores)
    sq_x, sq_y, sq_w, sq_h = sums[0], sums[1], sums[2], sums[3]
    s_conf_obj, s_conf_noobj = sums[4], sums[5]
    n_obj, n_noobj = sums[6], sums[7]
    n_obj_s = jnp.maximum(n_obj, 1.0)        # guard empty-target scales (avoid NaN/Inf)
    n_noobj_s = jnp.maximum(n_noobj, 1.0)

    loss_x = sq_x / n_obj_s
    loss_y = sq_y / n_obj_s
    loss_w = sq_w / n_obj_s
    loss_h = sq_h / n_obj_s
    loss_conf_obj = s_conf_obj / n_obj_s
    loss_conf_noobj = s_conf_noobj / n_noobj_s
    loss_conf = obj_scale * loss_conf_obj + noobj_scale * loss_conf_noobj

    # ---- sparse (<= nT object cells) losses computed in glue: cls BCE and wh ("Size") loss.
    # Boolean-mask gather in raster order of (b, a, gj, gi), exactly like the torch reference.
    nT = target.shape[0]
    flat_obj = obj.reshape(-1)                                   # (N,) raster order
    idx = jnp.nonzero(flat_obj > 0.5, size=nT, fill_value=N)[0]
    valid = (idx < N).astype(jnp.float32)                        # n_valid == n_obj (<= nT)
    idx_c = jnp.minimum(idx, N - 1)
    b_sel = idx_c // (A * G * G)
    a_sel = (idx_c // (G * G)) % A
    gj_sel = (idx_c // G) % G
    gi_sel = idx_c % G

    # classification BCE on gathered cells (moved out of the dense kernel)
    cls_z = pred[b_sel, a_sel, 5:, gj_sel, gi_sel].astype(jnp.float32)   # (nT, C)
    lbl_sel = lbl_map[b_sel, a_sel, gj_sel, gi_sel]
    tcls_sel = jax.nn.one_hot(lbl_sel, C, dtype=jnp.float32)
    bce_cls = jnp.minimum(_softplus(cls_z) - cls_z * tcls_sel, 100.0)
    n_sel = jnp.sum(valid)
    loss_cls = jnp.sum(bce_cls * valid[:, None]) / jnp.maximum(n_sel * C, 1.0)

    total_loss = loss_x + loss_y + loss_w + loss_h + loss_conf + loss_cls

    # wh ("Size") loss: bw/bh = exp(w)*anchor recomputed only at the gathered cells,
    # paired with target[:, 3:5] in list order as the reference does.
    w_sel = pred[b_sel, a_sel, 2, gj_sel, gi_sel].astype(jnp.float32)
    h_sel = pred[b_sel, a_sel, 3, gj_sel, gi_sel].astype(jnp.float32)
    bw = jnp.exp(w_sel) * scaled_anchors[a_sel, 0]
    bh = jnp.exp(h_sel) * scaled_anchors[a_sel, 1]
    bwbh = jnp.stack([bw, bh], axis=-1)                          # (nT, 2), grid-cell units
    tgt_wh = target[:, 3:5]
    d = (jnp.sqrt(jnp.abs(bwbh) + 1e-32)
         - jnp.sqrt(jnp.abs(tgt_wh) + 1e-32)) ** 2 * valid[:, None]
    wh_loss = jnp.sum(d) / jnp.maximum(2.0 * jnp.sum(valid), 1.0)    # MSELoss 'mean'

    return (total_loss, loss_x + loss_y, wh_loss, loss_conf, loss_cls,
            loss_conf_obj, loss_conf_noobj)


# ------------------------------------------------------------------ MultiScaleRegionLoss_v4.forward
def multi_scale_region_loss(outputs, target, anchors_all, anch_masks, num_classes, img_dim=64):
    # TODO(synk): for tiny grids, the padded column slabs of all scales could be concatenated
    # along the lane axis and reduced by one pallas_call to amortize per-launch overhead.
    acc = [jnp.float32(0.0)] * 7  # loss, coord, size, conf, cls, conf_obj, conf_noobj
    for i, out in enumerate(outputs):
        anchors_px = anchors_all[jnp.asarray(anch_masks[i], dtype=jnp.int32)]
        (sl, sl_coord, sl_size, sl_conf, sl_cls, sl_cobj, sl_cnoobj) = region_loss_scale(
            out, target, anchors_px, num_classes, img_dim)
        acc[0] = acc[0] + sl
        acc[1] = acc[1] + sl_coord
        acc[2] = acc[2] + sl_size
        acc[3] = acc[3] + sl_conf
        acc[4] = acc[4] + sl_cls
        acc[5] = acc[5] + sl_cobj
        acc[6] = acc[6] + sl_cnoobj
    n = float(len(outputs))
    return {
        'loss': acc[0] / n,
        'Localization': acc[1] / n,
        'Size': acc[2] / n,
        'Conf': acc[3] / n,
        'Classification': acc[4] / n,
        'Conf_obj': acc[5] / n,
        'Conf_noobj': acc[6] / n,
    }


if __name__ == "__main__":
    key = jax.random.PRNGKey(0)
    B, C = 2, 2                       # batch, num_classes
    img_dim = 64
    # 6 anchors (pixels), split 3-per-scale (deterministic, YOLO-style)
    anchors_all = jnp.array([[10., 13.], [16., 30.], [33., 23.],
                             [30., 61.], [62., 45.], [59., 119.]], jnp.float32)
    anch_masks = [[3, 4, 5], [0, 1, 2]]

    k1, k2 = jax.random.split(key)
    # two scales: G=8 and G=4, channels = 3*(5+C) = 21 (NCHW, like the torch conv outputs)
    out0 = 0.5 * jax.random.normal(k1, (B, 3 * (5 + C), 8, 8), jnp.float32)
    out1 = 0.5 * jax.random.normal(k2, (B, 3 * (5 + C), 4, 4), jnp.float32)

    # targets: [batch_idx, class_label, x, y, w, h] (normalized), 4 boxes
    target = jnp.array([[0, 0, 0.30, 0.30, 0.20, 0.25],
                        [0, 1, 0.70, 0.60, 0.10, 0.15],
                        [1, 0, 0.25, 0.75, 0.30, 0.20],
                        [1, 1, 0.60, 0.20, 0.15, 0.30]], jnp.float32)

    metrics = multi_scale_region_loss([out0, out1], target, anchors_all, anch_masks, C, img_dim)
    jax.block_until_ready(metrics)
    print("KERNEL_OK")
</pallas_src>

<mosaic_0001>
module attributes {stable_mosaic.version = 11 : i64} {
  func.func @_fused_region_loss_kernel(%arg0: i32, %arg1: i32, %arg2: memref<5x384xf32, #tpu.memory_space<vmem>>, %arg3: memref<6x384xf32, #tpu.memory_space<vmem>>, %arg4: memref<1x8x128xf32, #tpu.memory_space<vmem>>, %arg5: memref<8x128xf32, #tpu.memory_space<vmem>>) attributes {dimension_semantics = [#tpu.dimension_semantics<arbitrary>, #tpu.dimension_semantics<arbitrary>], iteration_bounds = array<i64: 1, 1>, scalar_prefetch = 0 : i64, scratch_operands = 1 : i64, tpu.core_type = #tpu.core_type<tc>, window_params = [{transform_indices = @transform_0, window_bounds = array<i64: 5, 384>}, {transform_indices = @transform_1, window_bounds = array<i64: 6, 384>}, {transform_indices = @transform_2, window_bounds = array<i64: 1, 8, 128>}]} {
    %c0_i32 = arith.constant 0 : i32
    %0 = arith.cmpi eq, %arg1, %c0_i32 : i32
    %1 = arith.extui %0 : i1 to i32
    %c0_i32_0 = arith.constant 0 : i32
    %2 = arith.cmpi ne, %1, %c0_i32_0 : i32
    scf.if %2 {
      %cst_62 = arith.constant 0.000000e+00 : f32
      %103 = vector.broadcast %cst_62 : f32 to vector<8x128xf32>
      %c0_63 = arith.constant 0 : index
      %c0_64 = arith.constant 0 : index
      %104 = vector.load %arg5[%c0_63, %c0_64] : memref<8x128xf32, #tpu.memory_space<vmem>>, vector<8x128xf32>
      tpu.vector_store %arg5[%c0_63, %c0_64], %103 {strides = array<i32>} : memref<8x128xf32, #tpu.memory_space<vmem>>, vector<8x128xf32>,
    } else {
    }
    %c4 = arith.constant 4 : index
    %c0 = arith.constant 0 : index
    %3 = vector.load %arg3[%c4, %c0] : memref<6x384xf32, #tpu.memory_space<vmem>>, vector<1x384xf32>
    %c5 = arith.constant 5 : index
    %c0_1 = arith.constant 0 : index
    %4 = vector.load %arg3[%c5, %c0_1] : memref<6x384xf32, #tpu.memory_space<vmem>>, vector<1x384xf32>
    %c0_2 = arith.constant 0 : index
    %c0_3 = arith.constant 0 : index
    %5 = vector.load %arg2[%c0_2, %c0_3] : memref<5x384xf32, #tpu.memory_space<vmem>>, vector<1x384xf32>
    %6 = arith.negf %5 : vector<1x384xf32>
    %7 = math.exp %6 : vector<1x384xf32>
    %cst = arith.constant 1.000000e+00 : f32
    %8 = vector.broadcast %cst : f32 to vector<1x384xf32>
    %9 = arith.addf %8, %7 : vector<1x384xf32>
    %10 = arith.divf %8, %9 : vector<1x384xf32>
    %c1 = arith.constant 1 : index
    %c0_4 = arith.constant 0 : index
    %11 = vector.load %arg2[%c1, %c0_4] : memref<5x384xf32, #tpu.memory_space<vmem>>, vector<1x384xf32>
    %12 = arith.negf %11 : vector<1x384xf32>
    %13 = math.exp %12 : vector<1x384xf32>
    %cst_5 = arith.constant 1.000000e+00 : f32
    %14 = vector.broadcast %cst_5 : f32 to vector<1x384xf32>
    %15 = arith.addf %14, %13 : vector<1x384xf32>
    %16 = arith.divf %14, %15 : vector<1x384xf32>
    %c0_6 = arith.constant 0 : index
    %c0_7 = arith.constant 0 : index
    %17 = vector.load %arg3[%c0_6, %c0_7] : memref<6x384xf32, #tpu.memory_space<vmem>>, vector<1x384xf32>
    %18 = arith.subf %10, %17 : vector<1x384xf32>
    %19 = arith.mulf %18, %18 : vector<1x384xf32>
    %20 = arith.mulf %19, %3 : vector<1x384xf32>
    %c1_8 = arith.constant 1 : index
    %c0_9 = arith.constant 0 : index
    %21 = vector.load %arg3[%c1_8, %c0_9] : memref<6x384xf32, #tpu.memory_space<vmem>>, vector<1x384xf32>
    %22 = arith.subf %16, %21 : vector<1x384xf32>
    %23 = arith.mulf %22, %22 : vector<1x384xf32>
    %24 = arith.mulf %23, %3 : vector<1x384xf32>
    %c2 = arith.constant 2 : index
    %c0_10 = arith.constant 0 : index
    %25 = vector.load %arg2[%c2, %c0_10] : memref<5x384xf32, #tpu.memory_space<vmem>>, vector<1x384xf32>
    %c2_11 = arith.constant 2 : index
    %c0_12 = arith.constant 0 : index
    %26 = vector.load %arg3[%c2_11, %c0_12] : memref<6x384xf32, #tpu.memory_space<vmem>>, vector<1x384xf32>
    %27 = arith.subf %25, %26 : vector<1x384xf32>
    %28 = arith.mulf %27, %27 : vector<1x384xf32>
    %29 = arith.mulf %28, %3 : vector<1x384xf32>
    %c3 = arith.constant 3 : index
    %c0_13 = arith.constant 0 : index
    %30 = vector.load %arg2[%c3, %c0_13] : memref<5x384xf32, #tpu.memory_space<vmem>>, vector<1x384xf32>
    %c3_14 = arith.constant 3 : index
    %c0_15 = arith.constant 0 : index
    %31 = vector.load %arg3[%c3_14, %c0_15] : memref<6x384xf32, #tpu.memory_space<vmem>>, vector<1x384xf32>
    %32 = arith.subf %30, %31 : vector<1x384xf32>
    %33 = arith.mulf %32, %32 : vector<1x384xf32>
    %34 = arith.mulf %33, %3 : vector<1x384xf32>
    %c4_16 = arith.constant 4 : index
    %c0_17 = arith.constant 0 : index
    %35 = vector.load %arg2[%c4_16, %c0_17] : memref<5x384xf32, #tpu.memory_space<vmem>>, vector<1x384xf32>
    %cst_18 = arith.constant 0.000000e+00 : f32
    %36 = vector.broadcast %cst_18 : f32 to vector<1x384xf32>
    %37 = arith.maximumf %35, %36 : vector<1x384xf32>
    %38 = math.absf %35 : vector<1x384xf32>
    %cst_19 = arith.constant 0.000000e+00 : f32
    %39 = vector.broadcast %cst_19 : f32 to vector<1x384xf32>
    %40 = arith.subf %39, %38 : vector<1x384xf32>
    %41 = math.exp %40 : vector<1x384xf32>
    %cst_20 = arith.constant 1.000000e+00 : f32
    %42 = vector.broadcast %cst_20 : f32 to vector<1x384xf32>
    %43 = arith.addf %42, %41 : vector<1x384xf32>
    %44 = math.log %43 : vector<1x384xf32>
    %45 = arith.addf %37, %44 : vector<1x384xf32>
    %46 = arith.mulf %35, %3 : vector<1x384xf32>
    %47 = arith.subf %45, %46 : vector<1x384xf32>
    %cst_21 = arith.constant 1.000000e+02 : f32
    %48 = vector.broadcast %cst_21 : f32 to vector<1x384xf32>
    %49 = arith.minimumf %47, %48 : vector<1x384xf32>
    %c0_22 = arith.constant 0 : index
    %c0_23 = arith.constant 0 : index
    %50 = vector.load %arg5[%c0_22, %c0_23] : memref<8x128xf32, #tpu.memory_space<vmem>>, vector<1x128xf32>
    %cst_24 = arith.constant dense<0.000000e+00> : vector<1xf32>
    %51 = vector.multi_reduction <add>, %20, %cst_24 [1] : vector<1x384xf32> to vector<1xf32>
    %52 = vector.shape_cast %51 : vector<1xf32> to vector<1x1xf32>
    %53 = vector.broadcast %52 : vector<1x1xf32> to vector<1x128xf32>
    %54 = arith.addf %50, %53 : vector<1x128xf32>
    %c0_25 = arith.constant 0 : index
    %c0_26 = arith.constant 0 : index
    %55 = vector.load %arg5[%c0_25, %c0_26] : memref<8x128xf32, #tpu.memory_space<vmem>>, vector<1x128xf32>
    tpu.vector_store %arg5[%c0_25, %c0_26], %54 {strides = array<i32>} : memref<8x128xf32, #tpu.memory_space<vmem>>, vector<1x128xf32>,
    %c1_27 = arith.constant 1 : index
    %c0_28 = arith.constant 0 : index
    %56 = vector.load %arg5[%c1_27, %c0_28] : memref<8x128xf32, #tpu.memory_space<vmem>>, vector<1x128xf32>
    %cst_29 = arith.constant dense<0.000000e+00> : vector<1xf32>
    %57 = vector.multi_reduction <add>, %24, %cst_29 [1] : vector<1x384xf32> to vector<1xf32>
    %58 = vector.shape_cast %57 : vector<1xf32> to vector<1x1xf32>
    %59 = vector.broadcast %58 : vector<1x1xf32> to vector<1x128xf32>
    %60 = arith.addf %56, %59 : vector<1x128xf32>
    %c1_30 = arith.constant 1 : index
    %c0_31 = arith.constant 0 : index
    %61 = vector.load %arg5[%c1_30, %c0_31] : memref<8x128xf32, #tpu.memory_space<vmem>>, vector<1x128xf32>
    tpu.vector_store %arg5[%c1_30, %c0_31], %60 {strides = array<i32>} : memref<8x128xf32, #tpu.memory_space<vmem>>, vector<1x128xf32>,
    %c2_32 = arith.constant 2 : index
    %c0_33 = arith.constant 0 : index
    %62 = vector.load %arg5[%c2_32, %c0_33] : memref<8x128xf32, #tpu.memory_space<vmem>>, vector<1x128xf32>
    %cst_34 = arith.constant dense<0.000000e+00> : vector<1xf32>
    %63 = vector.multi_reduction <add>, %29, %cst_34 [1] : vector<1x384xf32> to vector<1xf32>
    %64 = vector.shape_cast %63 : vector<1xf32> to vector<1x1xf32>
    %65 = vector.broadcast %64 : vector<1x1xf32> to vector<1x128xf32>
    %66 = arith.addf %62, %65 : vector<1x128xf32>
    %c2_35 = arith.constant 2 : index
    %c0_36 = arith.constant 0 : index
    %67 = vector.load %arg5[%c2_35, %c0_36] : memref<8x128xf32, #tpu.memory_space<vmem>>, vector<1x128xf32>
    tpu.vector_store %arg5[%c2_35, %c0_36], %66 {strides = array<i32>} : memref<8x128xf32, #tpu.memory_space<vmem>>, vector<1x128xf32>,
    %c3_37 = arith.constant 3 : index
    %c0_38 = arith.constant 0 : index
    %68 = vector.load %arg5[%c3_37, %c0_38] : memref<8x128xf32, #tpu.memory_space<vmem>>, vector<1x128xf32>
    %cst_39 = arith.constant dense<0.000000e+00> : vector<1xf32>
    %69 = vector.multi_reduction <add>, %34, %cst_39 [1] : vector<1x384xf32> to vector<1xf32>
    %70 = vector.shape_cast %69 : vector<1xf32> to vector<1x1xf32>
    %71 = vector.broadcast %70 : vector<1x1xf32> to vector<1x128xf32>
    %72 = arith.addf %68, %71 : vector<1x128xf32>
    %c3_40 = arith.constant 3 : index
    %c0_41 = arith.constant 0 : index
    %73 = vector.load %arg5[%c3_40, %c0_41] : memref<8x128xf32, #tpu.memory_space<vmem>>, vector<1x128xf32>
    tpu.vector_store %arg5[%c3_40, %c0_41], %72 {strides = array<i32>} : memref<8x128xf32, #tpu.memory_space<vmem>>, vector<1x128xf32>,
    %c4_42 = arith.constant 4 : index
    %c0_43 = arith.constant 0 : index
    %74 = vector.load %arg5[%c4_42, %c0_43] : memref<8x128xf32, #tpu.memory_space<vmem>>, vector<1x128xf32>
    %75 = arith.mulf %49, %3 : vector<1x384xf32>
    %cst_44 = arith.constant dense<0.000000e+00> : vector<1xf32>
    %76 = vector.multi_reduction <add>, %75, %cst_44 [1] : vector<1x384xf32> to vector<1xf32>
    %77 = vector.shape_cast %76 : vector<1xf32> to vector<1x1xf32>
    %78 = vector.broadcast %77 : vector<1x1xf32> to vector<1x128xf32>
    %79 = arith.addf %74, %78 : vector<1x128xf32>
    %c4_45 = arith.constant 4 : index
    %c0_46 = arith.constant 0 : index
    %80 = vector.load %arg5[%c4_45, %c0_46] : memref<8x128xf32, #tpu.memory_space<vmem>>, vector<1x128xf32>
    tpu.vector_store %arg5[%c4_45, %c0_46], %79 {strides = array<i32>} : memref<8x128xf32, #tpu.memory_space<vmem>>, vector<1x128xf32>,
    %c5_47 = arith.constant 5 : index
    %c0_48 = arith.constant 0 : index
    %81 = vector.load %arg5[%c5_47, %c0_48] : memref<8x128xf32, #tpu.memory_space<vmem>>, vector<1x128xf32>
    %82 = arith.mulf %49, %4 : vector<1x384xf32>
    %cst_49 = arith.constant dense<0.000000e+00> : vector<1xf32>
    %83 = vector.multi_reduction <add>, %82, %cst_49 [1] : vector<1x384xf32> to vector<1xf32>
    %84 = vector.shape_cast %83 : vector<1xf32> to vector<1x1xf32>
    %85 = vector.broadcast %84 : vector<1x1xf32> to vector<1x128xf32>
    %86 = arith.addf %81, %85 : vector<1x128xf32>
    %c5_50 = arith.constant 5 : index
    %c0_51 = arith.constant 0 : index
    %87 = vector.load %arg5[%c5_50, %c0_51] : memref<8x128xf32, #tpu.memory_space<vmem>>, vector<1x128xf32>
    tpu.vector_store %arg5[%c5_50, %c0_51], %86 {strides = array<i32>} : memref<8x128xf32, #tpu.memory_space<vmem>>, vector<1x128xf32>,
    %c6 = arith.constant 6 : index
    %c0_52 = arith.constant 0 : index
    %88 = vector.load %arg5[%c6, %c0_52] : memref<8x128xf32, #tpu.memory_space<vmem>>, vector<1x128xf32>
    %cst_53 = arith.constant dense<0.000000e+00> : vector<1xf32>
    %89 = vector.multi_reduction <add>, %3, %cst_53 [1] : vector<1x384xf32> to vector<1xf32>
    %90 = vector.shape_cast %89 : vector<1xf32> to vector<1x1xf32>
    %91 = vector.broadcast %90 : vector<1x1xf32> to vector<1x128xf32>
    %92 = arith.addf %88, %91 : vector<1x128xf32>
    %c6_54 = arith.constant 6 : index
    %c0_55 = arith.constant 0 : index
    %93 = vector.load %arg5[%c6_54, %c0_55] : memref<8x128xf32, #tpu.memory_space<vmem>>, vector<1x128xf32>
    tpu.vector_store %arg5[%c6_54, %c0_55], %92 {strides = array<i32>} : memref<8x128xf32, #tpu.memory_space<vmem>>, vector<1x128xf32>,
    %c7 = arith.constant 7 : index
    %c0_56 = arith.constant 0 : index
    %94 = vector.load %arg5[%c7, %c0_56] : memref<8x128xf32, #tpu.memory_space<vmem>>, vector<1x128xf32>
    %cst_57 = arith.constant dense<0.000000e+00> : vector<1xf32>
    %95 = vector.multi_reduction <add>, %4, %cst_57 [1] : vector<1x384xf32> to vector<1xf32>
    %96 = vector.shape_cast %95 : vector<1xf32> to vector<1x1xf32>
    %97 = vector.broadcast %96 : vector<1x1xf32> to vector<1x128xf32>
    %98 = arith.addf %94, %97 : vector<1x128xf32>
    %c7_58 = arith.constant 7 : index
    %c0_59 = arith.constant 0 : index
    %99 = vector.load %arg5[%c7_58, %c0_59] : memref<8x128xf32, #tpu.memory_space<vmem>>, vector<1x128xf32>
    tpu.vector_store %arg5[%c7_58, %c0_59], %98 {strides = array<i32>} : memref<8x128xf32, #tpu.memory_space<vmem>>, vector<1x128xf32>,
    %c0_i32_60 = arith.constant 0 : i32
    %100 = arith.cmpi eq, %arg1, %c0_i32_60 : i32
    %101 = arith.extui %100 : i1 to i32
    %c0_i32_61 = arith.constant 0 : i32
    %102 = arith.cmpi ne, %101, %c0_i32_61 : i32
    scf.if %102 {
      %c0_62 = arith.constant 0 : index
      %c0_63 = arith.constant 0 : index
      %103 = vector.load %arg5[%c0_62, %c0_63] : memref<8x128xf32, #tpu.memory_space<vmem>>, vector<8x128xf32>
      %104 = vector.shape_cast %103 : vector<8x128xf32> to vector<1x8x128xf32>
      %c0_64 = arith.constant 0 : index
      %c0_65 = arith.constant 0 : index
      %c0_66 = arith.constant 0 : index
      %105 = vector.load %arg4[%c0_64, %c0_65, %c0_66] : memref<1x8x128xf32, #tpu.memory_space<vmem>>, vector<1x8x128xf32>
      tpu.vector_store %arg4[%c0_64, %c0_65, %c0_66], %104 {strides = array<i32>} : memref<1x8x128xf32, #tpu.memory_space<vmem>>, vector<1x8x128xf32>,
    } else {
    }
    return
  }
  func.func @transform_0(%arg0: i32, %arg1: i32) -> (i32, i32) {
    %c1_i32 = arith.constant 1 : i32
    %0 = arith.muli %arg0, %c1_i32 : i32
    %1 = arith.addi %0, %arg1 : i32
    %c0_i32 = arith.constant 0 : i32
    %c0_i32_0 = arith.constant 0 : i32
    return %c0_i32, %1 : i32, i32
  }
  func.func @transform_1(%arg0: i32, %arg1: i32) -> (i32, i32) {
    %c1_i32 = arith.constant 1 : i32
    %0 = arith.muli %arg0, %c1_i32 : i32
    %1 = arith.addi %0, %arg1 : i32
    %c0_i32 = arith.constant 0 : i32
    %c0_i32_0 = arith.constant 0 : i32
    return %c0_i32, %1 : i32, i32
  }
  func.func @transform_2(%arg0: i32, %arg1: i32) -> (i32, i32, i32) {
    %c0_i32 = arith.constant 0 : i32
    %c0_i32_0 = arith.constant 0 : i32
    %c0_i32_1 = arith.constant 0 : i32
    return %arg0, %c0_i32, %c0_i32_0 : i32, i32, i32
  }
}

</mosaic_0001>

<bundles_post_ra>
// kernel: tpu_custom_call.1
= control target key start
LH: loop header
LB: loop body
LE: loop exit
PB: predicated region body
PF: predicated region fallthrough
CT: control target
= control target key end

     0   :  { %7 = vsyncpa [#allocation4], 0  ;;  %s523_s0 = inlined_call_operand.hbm [shape: f32[5,384], index: 0, kind: input, shape index: {}]   ;;  %s524_s1 = inlined_call_operand.hbm [shape: f32[6,384], index: 1, kind: input, shape index: {}]   ;;  %s525_s2 = inlined_call_operand.hbm [shape: f32[1,8,128], index: 2, kind: output, shape index: {}]  }
   0x1   :  { %8 = vsyncpa [#allocation7], 0 }
   0x2   :  { %9 = vsyncpa [#allocation5], 0  ;;  %s425_s9 = smov [#allocation3]   ;;  %s426_s11 = smov [#allocation6]  }
   0x3   :  { %s20_s10 = sshll.u32 %s425_s9, 4  ;;  %s34_s12 = sshll.u32 %s426_s11, 4  ;;  %s21_s10 = int_to_ptr.vmem [resolvable:$true] %s20_s10  ;;  %s35_s12 = int_to_ptr.vmem [resolvable:$true] %s34_s12 }
   0x4   :  { %s367_s13 = scalar_lea.vmem %s21_s10, 384  ;;  %p372_p1 = scmp.lt.s32.totalorder %s21_s10, %s21_s10 }
   0x5   :  { %p368_p0 = scmp.ne.s32.totalorder %s21_s10, %s367_s13  ;;  %p373_p2 = scmp.lt.s32.totalorder %s367_s13, %s367_s13 }
   0x7   :  { %p374_p3 = por %p373_p2, %p372_p1 }
   0x9   :  { %p375_p4 = pnand %p374_p3, %p368_p0 }
   0xb   :  { %378 = shalt.err (!%p375_p4)
}
   0xc   :  { %23 = dma.hbm_to_vmem [thread:$0]  %s523_s0, 384, %s21_s10, [#allocation4]  }
   0xd   :  { %s387_s16 = scalar_lea.vmem %s35_s12, 384  ;;  %p392_p6 = scmp.lt.s32.totalorder %s35_s12, %s35_s12 }
   0xe   :  { %p388_p5 = scmp.ne.s32.totalorder %s35_s12, %s387_s16  ;;  %p393_p7 = scmp.lt.s32.totalorder %s387_s16, %s387_s16 }
  0x10   :  { %p394_p8 = por %p393_p7, %p392_p6 }
  0x12   :  { %p395_p9 = pnand %p394_p8, %p388_p5 }
  0x14   :  { %398 = shalt.err (!%p395_p9)
}
  0x15   :  { %37 = dma.hbm_to_vmem [thread:$0]  %s524_s1, 384, %s35_s12, [#allocation7]  }
  0x16   :  { %419 = dma.done.wait [#allocation4], 384  }
  0x17   :  { %420 = vsyncadd [#allocation4], 4294966912 }
  0x18   :  { %421 = dma.done.wait [#allocation7], 384  }
  0x19   :  { %422 = vsyncadd [#allocation7], 4294966912  ;;  %v111_v0 = vlaneseq  ;;  %v427_v1 = vmov 0.0   ;;  %v82_v3 = vld [vmem:[#allocation3 + $0x2] ss:$8 sm:$0x7] }
  0x1a   :  { %52 = vst [vmem:[#allocation2] sm:$0xff] %v427_v1  ;;  %v84_v5 = vld [vmem:[#allocation6 + $0x2] ss:$8 sm:$0x7]  ;;  %vm126_vm0 = vcmask 1040384   ;;  %s428_s0 = smov [#allocation8]  }
  0x1b   :  { %v112_v2 = vshrl.u32 %v111_v0, 7  ;;  %v57_v6 = vld [vmem:[#allocation3] ss:$8 sm:$0x7]  ;;  %v85_v8 = vsub.f32 %v82_v3, %v84_v5  ;;  %s331_s1 = sshll.u32 %s428_s0, 4  ;;  %s332_s1 = int_to_ptr.vmem [resolvable:$true] %s331_s1 }
  0x1c   :  { %v452_v7 = vld [vmem:[#allocation6 + $0x4] ss:$8 sm:$0x7]  ;;  %v341_v10 = vmul.f32 -1.442695, %v57_v6  ;;  %s399_s19 = scalar_lea.vmem %s332_s1, 128  ;;  %p404_p11 = scmp.lt.s32.totalorder %s332_s1, %s332_s1 }
  0x1d   :  { %v450_v4 = vsub.s32 0, %v112_v2  ;;  %v454_v9 = vsub.s32 1, %v112_v2  ;;  %v89_v11 = vld [vmem:[#allocation3 + $0x3] ss:$8 sm:$0x7]  ;;  %v86_v13 = vmul.f32 %v85_v8, %v85_v8  ;;  %v456_v14 = vsub.s32 2, %v112_v2  ;;  %p400_p10 = scmp.ne.s32.totalorder %s332_s1, %s399_s19  ;;  %p405_p12 = scmp.lt.s32.totalorder %s399_s19, %s399_s19 }
  0x1e   :  { %v91_v12 = vld [vmem:[#allocation6 + $0x3] ss:$8 sm:$0x7]  ;;  %347 = vpow2.f32 %v341_v10  ;;  %v65_v16 = vld [vmem:[#allocation3 + $0x1] ss:$8 sm:$0x7] }
  0x1f   :  { %v92_v15 = vsub.f32 %v89_v11, %v91_v12  ;;  %v342_v17 = vmul.f32 -1.442695, %v65_v16  ;;  %v87_v18 = vmul.f32 %v86_v13, %v452_v7  ;;  %v459_v20 = vld [vmem:[#allocation3 + $0x4] ss:$8 sm:$0x7]  ;;  %p406_p13 = por %p405_p12, %p404_p11 }
  0x20   :  { %v98_v21 = vand.u32 2147483647, %v459_v20  ;;  %v72_v47 = vld [vmem:[#allocation6] ss:$8 sm:$0x7]  ;;  %v97_v0 = vmax.f32 %v459_v20, 0.0  ;;  %v106_v8 = vmul.f32 %v459_v20, %v452_v7  ;;  %v273_v20 = vrot.slane %v452_v7, %v450_v4 }
  0x21   :  { %v93_v19 = vmul.f32 %v92_v15, %v92_v15  ;;  %349 = vpow2.f32 %v342_v17  ;;  %v167_v22 = vrot.slane %v87_v18, %v450_v4  ;;  %v171_v23 = vrot.slane %v87_v18, %v454_v9  ;;  %v77_v50 = vld [vmem:[#allocation6 + $0x1] ss:$8 sm:$0x7]  ;;  %p407_p0 = pnand %p406_p13, %p400_p10 }
  0x22   :  { %v175_v24 = vrot.slane %v87_v18, %v456_v14  ;;  %v99_v26 = vsub.f32 0.0, %v98_v21  ;;  %v56_v18 = vld [vmem:[#allocation6 + $0x5] ss:$8 sm:$0x7] }
  0x23   :  { %v94_v25 = vmul.f32 %v93_v19, %v452_v7  ;;  %v179_v27 = vsel %vm126_vm0, %v167_v22, 0.0  ;;  %v180_v28 = vsel %vm126_vm0, %v171_v23, 0.0  ;;  %v299_v21 = vrot.slane %v56_v18, %v450_v4 }
  0x24   :  { %v182_v29 = vsel %vm126_vm0, %v175_v24, 0.0  ;;  %v181_v31 = vadd.f32 %v180_v28, %v179_v27  ;;  %v100_v34 = vmul.f32 1.442695, %v99_v26  ;;  %v303_v22 = vrot.slane %v56_v18, %v454_v9 }
  0x25   :  { %v193_v30 = vrot.slane %v94_v25, %v450_v4  ;;  %v197_v32 = vrot.slane %v94_v25, %v454_v9  ;;  %v201_v33 = vrot.slane %v94_v25, %v456_v14  ;;  %v277_v24 = vrot.slane %v452_v7, %v454_v9 }
  0x26   :  { %v183_v36 = vadd.f32 %v182_v29, %v181_v31  ;;  %351 = vpow2.f32 %v100_v34  ;;  %v307_v27 = vrot.slane %v56_v18, %v456_v14  ;;  %v311_v28 = vsel %vm126_vm0, %v299_v21, 0.0 }
  0x27   :  { %v205_v35 = vsel %vm126_vm0, %v193_v30, 0.0  ;;  %v206_v37 = vsel %vm126_vm0, %v197_v32, 0.0  ;;  %v208_v38 = vsel %vm126_vm0, %v201_v33, 0.0  ;;  %v312_v29 = vsel %vm126_vm0, %v303_v22, 0.0 }
  0x28   :  { %v207_v39 = vadd.f32 %v206_v37, %v205_v35  ;;  %184 = vadd.xlane.f32.xlu1 %v183_v36  ;;  %v281_v30 = vrot.slane %v452_v7, %v456_v14  ;;  %v285_v37 = vsel %vm126_vm0, %v273_v20, 0.0 }
  0x2a   :  { %v209_v40 = vadd.f32 %v208_v38, %v207_v39  ;;  %v286_v38 = vsel %vm126_vm0, %v277_v24, 0.0 }
  0x2b   :  { %v348_v41 = vpop.eup %347 }
  0x2c   :  { %v61_v42 = vadd.f32 1.0, %v348_v41  ;;  %210 = vadd.xlane.f32.xlu1 %v209_v40 }
  0x2e   :  { %v350_v43 = vpop.eup %349  ;;  %353 = vrcp.f32 %v61_v42 }
  0x2f   :  { %v69_v44 = vadd.f32 1.0, %v350_v43 }
  0x31   :  { %355 = vrcp.f32 %v69_v44 }
  0x33   :  { %v352_v45 = vpop.eup %351 }
  0x34   :  { %v102_v46 = vadd.f32 1.0, %v352_v45  ;;  %v287_v45 = vadd.f32 %v286_v38, %v285_v37 }
  0x36   :  { %357 = vlog2.f32 %v102_v46 }
  0x3b   :  { %v354_v48 = vpop.eup %353 }
  0x3c   :  { %v73_v49 = vsub.f32 %v354_v48, %v72_v47  ;;  %v288_v47 = vsel %vm126_vm0, %v281_v30, 0.0 }
  0x3e   :  { %v356_v51 = vpop.eup %355  ;;  %v74_v52 = vmul.f32 %v73_v49, %v73_v49 }
  0x3f   :  { %v78_v53 = vsub.f32 %v356_v51, %v77_v50  ;;  %v289_v50 = vadd.f32 %v288_v47, %v287_v45  ;;  %v162_v51 = vld [vmem:[#allocation2 + $0x2] sm:$0x1] }
  0x40   :  { %v75_v54 = vmul.f32 %v74_v52, %v452_v7 }
  0x41   :  { %v79_v55 = vmul.f32 %v78_v53, %v78_v53 }
  0x42   :  { %v114_v56 = vrot.slane %v75_v54, %v450_v4  ;;  %v118_v57 = vrot.slane %v75_v54, %v454_v9  ;;  %v122_v58 = vrot.slane %v75_v54, %v456_v14  ;;  %v188_v54 = vld [vmem:[#allocation2 + $0x3] sm:$0x1] }
  0x43   :  { %v80_v59 = vmul.f32 %v79_v55, %v452_v7  ;;  %v358_v60 = vpop.eup %357 }
  0x44   :  { %v127_v61 = vsel %vm126_vm0, %v114_v56, 0.0  ;;  %v128_v62 = vsel %vm126_vm0, %v118_v57, 0.0  ;;  %v130_v63 = vsel %vm126_vm0, %v122_v58, 0.0  ;;  %v104_v6 = vmul.f32 0.6931472, %v358_v60 }
  0x45   :  { %v129_v1 = vadd.f32 %v128_v62, %v127_v61  ;;  %v141_v2 = vrot.slane %v80_v59, %v450_v4  ;;  %v145_v3 = vrot.slane %v80_v59, %v454_v9  ;;  %v149_v5 = vrot.slane %v80_v59, %v456_v14  ;;  %v109_v57 = vld [vmem:[#allocation2] sm:$0x1]  ;;  %v136_v60 = vld [vmem:[#allocation2 + $0x1] sm:$0x1] }
  0x46   :  { %v105_v16 = vadd.f32 %v104_v6, %v97_v0  ;;  %v214_v0 = vld [vmem:[#allocation2 + $0x4] sm:$0x1]  ;;  %v294_v6 = vld [vmem:[#allocation2 + $0x7] sm:$0x1] }
  0x47   :  { %v131_v10 = vadd.f32 %v130_v63, %v129_v1  ;;  %v153_v11 = vsel %vm126_vm0, %v141_v2, 0.0  ;;  %v154_v12 = vsel %vm126_vm0, %v145_v3, 0.0  ;;  %v156_v13 = vsel %vm126_vm0, %v149_v5, 0.0  ;;  %v241_v63 = vld [vmem:[#allocation2 + $0x5] sm:$0x1] }
  0x48   :  { %v155_v15 = vadd.f32 %v154_v12, %v153_v11  ;;  %v107_v19 = vsub.f32 %v105_v16, %v106_v8  ;;  %v268_v8 = vld [vmem:[#allocation2 + $0x6] sm:$0x1] }
  0x49   :  { %132 = vadd.xlane.f32.xlu0 %v131_v10 }
  0x4a   :  { %v157_v17 = vadd.f32 %v156_v13, %v155_v15  ;;  %v108_v23 = vmin.f32 %v107_v19, 100.0 }
  0x4c   :  { %v242_v25 = vmul.f32 %v108_v23, %v56_v18  ;;  %v215_v26 = vmul.f32 %v108_v23, %v452_v7 }
  0x4d   :  { %158 = vadd.xlane.f32.xlu0 %v157_v17 }
  0x4e   :  { %v247_v31 = vrot.slane %v242_v25, %v450_v4  ;;  %v251_v32 = vrot.slane %v242_v25, %v454_v9  ;;  %v255_v33 = vrot.slane %v242_v25, %v456_v14  ;;  %v220_v34 = vrot.slane %v215_v26, %v450_v4 }
  0x4f   :  { %v224_v35 = vrot.slane %v215_v26, %v454_v9  ;;  %v228_v36 = vrot.slane %v215_v26, %v456_v14  ;;  %v313_v9 = vadd.f32 %v312_v29, %v311_v28  ;;  %v314_v14 = vsel %vm126_vm0, %v307_v27, 0.0 }
  0x50   :  { %v259_v39 = vsel %vm126_vm0, %v247_v31, 0.0  ;;  %v260_v7 = vsel %vm126_vm0, %v251_v32, 0.0  ;;  %v262_v40 = vsel %vm126_vm0, %v255_v33, 0.0  ;;  %v232_v41 = vsel %vm126_vm0, %v220_v34, 0.0 }
  0x51   :  { %v261_v42 = vadd.f32 %v260_v7, %v259_v39  ;;  %v233_v43 = vsel %vm126_vm0, %v224_v35, 0.0  ;;  %v235_v4 = vsel %vm126_vm0, %v228_v36, 0.0  ;;  %v315_v49 = vadd.f32 %v314_v14, %v313_v9 }
  0x52   :  { %v234_v44 = vadd.f32 %v233_v43, %v232_v41 }
  0x53   :  { %v263_v46 = vadd.f32 %v262_v40, %v261_v42 }
  0x54   :  { %v236_v48 = vadd.f32 %v235_v4, %v234_v44 }
  0x55   :  { %264 = vadd.xlane.f32.xlu1 %v263_v46 }
  0x56   :  { %237 = vadd.xlane.f32.xlu0 %v236_v48 }
  0x59   :  { %316 = vadd.xlane.f32.xlu1 %v315_v49 }
  0x5a   :  { %290 = vadd.xlane.f32.xlu0 %v289_v50 }
  0xb1   :  { %v185_v52 = vpop.xlane.xlu1 %184 }
  0xb2   :  { %v186_v53 = vadd.f32 %v185_v52, %v162_v51 }
  0xb4   :  { %187 = vst [vmem:[#allocation2 + $0x2] sm:$0x1] %v186_v53 }
  0xb5   :  { %v211_v55 = vpop.xlane.xlu1 %210 }
  0xb6   :  { %v212_v56 = vadd.f32 %v211_v55, %v188_v54 }
  0xb8   :  { %213 = vst [vmem:[#allocation2 + $0x3] sm:$0x1] %v212_v56 }
  0xd2   :  { %v133_v58 = vpop.xlane.xlu0 %132 }
  0xd3   :  { %v134_v59 = vadd.f32 %v133_v58, %v109_v57 }
  0xd5   :  { %135 = vst [vmem:[#allocation2] sm:$0x1] %v134_v59 }
  0xd6   :  { %v159_v61 = vpop.xlane.xlu0 %158 }
  0xd7   :  { %v160_v62 = vadd.f32 %v159_v61, %v136_v60 }
  0xd9   :  { %161 = vst [vmem:[#allocation2 + $0x1] sm:$0x1] %v160_v62 }
  0xde   :  { %v265_v1 = vpop.xlane.xlu1 %264 }
  0xdf   :  { %v266_v2 = vadd.f32 %v265_v1, %v241_v63  ;;  %v238_v3 = vpop.xlane.xlu0 %237 }
  0xe0   :  { %v239_v5 = vadd.f32 %v238_v3, %v214_v0 }
  0xe1   :  { %267 = vst [vmem:[#allocation2 + $0x5] sm:$0x1] %v266_v2 }
  0xe2   :  { %240 = vst [vmem:[#allocation2 + $0x4] sm:$0x1] %v239_v5  ;;  %v317_v10 = vpop.xlane.xlu1 %316 }
  0xe3   :  { %v318_v11 = vadd.f32 %v317_v10, %v294_v6  ;;  %v291_v12 = vpop.xlane.xlu0 %290 }
  0xe4   :  { %v292_v13 = vadd.f32 %v291_v12, %v268_v8 }
  0xe5   :  { %319 = vst [vmem:[#allocation2 + $0x7] sm:$0x1] %v318_v11 }
  0xe6   :  { %293 = vst [vmem:[#allocation2 + $0x6] sm:$0x1] %v292_v13 }
  0xed   :  { %v323_v15 = vld [vmem:[#allocation2] sm:$0xff] }
  0xee   :  { %324 = vst [vmem:[#allocation8] sm:$0xff] %v323_v15 }
  0xef   :  { %410 = shalt.err (!%p407_p0)
}
  0xf0   :  { %334 = dma.vmem_to_hbm [thread:$0]  %s332_s1, 128, %s525_s2, [#allocation5]  }
  0xf1   :  { %423 = dma.done.wait [#allocation5], 128  }
  0xf2   :  { %424 = vsyncadd [#allocation5], 4294967168 }
  0xf3   :  { %338 = vsyncpa [#allocation4], 1 }
  0xf4   :  { %339 = vsyncpa [#allocation7], 1 }
  0xf5   :  { %340 = vsyncpa [#allocation5], 1 }

</bundles_post_ra>
